<compile_context>
chip_gen: v6e
topology: v6e:2x2x1
jax: 0.10.0
libtpu: 0.0.40
codegen_flags: <defaults>
</compile_context>

<pallas_src>
import functools

import jax
import jax.numpy as jnp
from jax.experimental import pallas as pl
from jax.experimental.pallas import tpu as pltpu


# ---------------------------------------------------------------------------
# Tile-size / VMEM helpers (respect the (8, 128) BlockSpec constraint)
# ---------------------------------------------------------------------------

_TM_TARGET = 512      # row tile (sublane axis), multiple of 16 for bf16
_TN_TARGET = 4096     # output-lane tile (usually = full N -> resident weight)

_VMEM_LIMIT_CACHE = None


def _vmem_limit():
    """~75% of the chip's VMEM, capped at 100 MiB (v5e/v6e: ~96MiB, v7x: 48MiB)."""
    global _VMEM_LIMIT_CACHE
    if _VMEM_LIMIT_CACHE is None:
        try:
            cap = pltpu.get_tpu_info().vmem_capacity_bytes
        except Exception:
            cap = 64 * 1024 * 1024
        _VMEM_LIMIT_CACHE = min(int(cap * 3 // 4), 100 * 1024 * 1024)
    return _VMEM_LIMIT_CACHE


def _tile_sub(dim, target, align=16):
    """Sublane-axis tile: full dim, or a multiple of `align` dividing dim."""
    if dim <= target or dim % align != 0:
        return dim
    t = (min(target, dim) // align) * align
    while dim % t:
        t -= align
    return t


def _tile_lane(dim, target):
    """Lane-axis tile: full dim, or a multiple of 128 dividing dim."""
    if dim % 128 != 0 or dim <= target:
        return dim
    t = (min(target, dim) // 128) * 128
    while dim % t:
        t -= 128
    return t


def _round_up(x, m):
    return ((x + m - 1) // m) * m


# ---------------------------------------------------------------------------
# Fused (LayerNorm) -> matmul -> bias -> (activation) -> (+residual) kernel
# Weight is VMEM-resident per call (no K grid axis, no accumulator scratch).
# ---------------------------------------------------------------------------

def _fused_linear_kernel(*refs, has_ln, has_res, activation, eps, true_k):
    idx = 0
    x_ref = refs[idx]; idx += 1
    w_ref = refs[idx]; idx += 1
    b_ref = refs[idx]; idx += 1
    if has_res:
        res_ref = refs[idx]; idx += 1
    o_ref = refs[idx]

    x = x_ref[...]
    if has_ln:
        # gamma/beta are folded into w/b outside the kernel; only center+scale
        # here.  Centered variance (not E[x^2]-E[x]^2) for numerical safety.
        xf = x.astype(jnp.float32)
        mu = jnp.sum(xf, axis=-1, keepdims=True) * (1.0 / true_k)
        xc = xf - mu
        var = jnp.sum(xc * xc, axis=-1, keepdims=True) * (1.0 / true_k)
        rstd = jax.lax.rsqrt(var + eps)
        x = (xc * rstd).astype(w_ref.dtype)

    y = jnp.dot(x, w_ref[...], preferred_element_type=jnp.float32)
    y = y + b_ref[...]

    if activation == "quick_gelu":            # HF CLIP activation
        y = y * (1.0 / (1.0 + jnp.exp(-1.702 * y)))
    elif activation == "gelu_tanh":
        # TODO(synk): DINOv2 uses exact erf-GELU; tanh approximation used here.
        y = 0.5 * y * (1.0 + jnp.tanh(
            0.7978845608028654 * (y + 0.044715 * y * y * y)))

    if has_res:
        y = y + res_ref[...].astype(jnp.float32)

    o_ref[...] = y.astype(o_ref.dtype)


def fused_linear(x, w, b, *, ln=None, residual=None, activation="none",
                 out_dtype=jnp.bfloat16):
    """out = act(LN(x) @ w + b) (+ residual).   x:(M,K)  w:(K,N)  b:(N,)."""
    M, K = x.shape
    K2, N = w.shape
    assert K == K2

    xb = x.astype(jnp.bfloat16)
    has_ln = ln is not None
    eps = 1e-5
    if has_ln:
        gamma, beta, eps = ln
        wf = w.astype(jnp.float32)
        wb = (gamma.astype(jnp.float32)[:, None] * wf).astype(jnp.bfloat16)
        bf = b.astype(jnp.float32) + beta.astype(jnp.float32) @ wf
    else:
        wb = w.astype(jnp.bfloat16)
        bf = b.astype(jnp.float32)
    b2 = bf.reshape(1, N)

    tm = _tile_sub(M, _TM_TARGET)
    tn = _tile_lane(N, _TN_TARGET)
    grid = (M // tm, N // tn)

    inputs = [xb, wb, b2]
    in_specs = [
        pl.BlockSpec((tm, K), lambda i, j: (i, 0)),      # full K per block
        pl.BlockSpec((K, tn), lambda i, j: (0, j)),      # resident weight
        pl.BlockSpec((1, tn), lambda i, j: (0, j)),
    ]

    has_res = residual is not None
    if has_res:
        inputs.append(residual.astype(jnp.bfloat16))
        in_specs.append(pl.BlockSpec((tm, tn), lambda i, j: (i, j)))

    kernel = functools.partial(
        _fused_linear_kernel, has_ln=has_ln, has_res=has_res,
        activation=activation, eps=float(eps), true_k=float(K))

    return pl.pallas_call(
        kernel,
        out_shape=jax.ShapeDtypeStruct((M, N), out_dtype),
        grid=grid,
        in_specs=in_specs,
        out_specs=pl.BlockSpec((tm, tn), lambda i, j: (i, j)),
        compiler_params=pltpu.CompilerParams(
            dimension_semantics=("parallel", "parallel"),
            vmem_limit_bytes=_vmem_limit()),
    )(*inputs)


# ---------------------------------------------------------------------------
# Multi-head self-attention: grid over (batch, head), both axes parallel.
# ---------------------------------------------------------------------------

def _attention_kernel(q_ref, k_ref, v_ref, o_ref, *, t_true, scale):
    q = q_ref[0, 0]                                     # (T_pad, d_head) bf16
    k = k_ref[0, 0]
    v = v_ref[0, 0]
    t_pad = q.shape[0]

    qs = (q.astype(jnp.float32) * scale).astype(jnp.bfloat16)  # fold scale
    s = jnp.dot(qs, k.T, preferred_element_type=jnp.float32)   # (T_pad,T_pad)
    key_valid = jax.lax.broadcasted_iota(jnp.int32, (t_pad, t_pad), 1) < t_true
    s = jnp.where(key_valid, s, -1e30)                  # mask padded keys

    m = jnp.max(s, axis=-1, keepdims=True)
    p = jnp.exp(s - m)
    denom = jnp.sum(p, axis=-1, keepdims=True)
    o = jnp.dot(p.astype(jnp.bfloat16), v, preferred_element_type=jnp.float32)
    o_ref[0, 0] = (o / denom).astype(o_ref.dtype)       # exact divide


def attention(qkv, *, num_heads, hidden, t_true, out_dtype=jnp.bfloat16):
    """qkv: (B, T_pad, 3*hidden) with layout [q | k | v].  Returns (B,T_pad,hidden)."""
    B, t_pad, _ = qkv.shape
    d_head = hidden // num_heads
    scale = 1.0 / (d_head ** 0.5)

    # One layout transform outside the kernel: per-head (B, H, T_pad, d_head).
    qkv5 = qkv.astype(jnp.bfloat16).reshape(B, t_pad, 3, num_heads, d_head)
    q = qkv5[:, :, 0].transpose(0, 2, 1, 3)
    k = qkv5[:, :, 1].transpose(0, 2, 1, 3)
    v = qkv5[:, :, 2].transpose(0, 2, 1, 3)

    spec = pl.BlockSpec((1, 1, t_pad, d_head), lambda b, h: (b, h, 0, 0))
    out = pl.pallas_call(
        functools.partial(_attention_kernel, t_true=t_true, scale=scale),
        out_shape=jax.ShapeDtypeStruct((B, num_heads, t_pad, d_head), out_dtype),
        grid=(B, num_heads),
        in_specs=[spec, spec, spec],
        out_specs=spec,
        compiler_params=pltpu.CompilerParams(
            dimension_semantics=("parallel", "parallel"),
            vmem_limit_bytes=_vmem_limit()),
    )(q, k, v)

    return out.transpose(0, 2, 1, 3).reshape(B, t_pad, hidden)


# ---------------------------------------------------------------------------
# ViT tower (shared by CLIP / DINO branches)
# ---------------------------------------------------------------------------

def init_vit_params(key, *, in_ch, patch, hidden, num_layers, num_tokens,
                    mlp_ratio=4):
    scale = 0.02
    keys = jax.random.split(key, 3 + 4 * num_layers)

    k_in = in_ch * patch * patch
    k_pad = _round_up(k_in, 128)          # lane/sublane-aligned contraction
    w_patch = jax.random.normal(keys[0], (k_in, hidden), jnp.float32) * scale
    w_patch = jnp.zeros((k_pad, hidden), jnp.float32).at[:k_in].set(w_patch)

    params = {
        "patch": patch,
        "hidden": hidden,
        "w_patch": w_patch.astype(jnp.bfloat16),
        "b_patch": jnp.zeros((hidden,), jnp.float32),
        "cls": (jax.random.normal(keys[1], (1, 1, hidden), jnp.float32)
                * scale).astype(jnp.bfloat16),
        "pos": (jax.random.normal(keys[2], (1, num_tokens, hidden), jnp.float32)
                * scale).astype(jnp.bfloat16),
        "layers": [],
    }
    for i in range(num_layers):
        k0, k1, k2, k3 = keys[3 + 4 * i: 3 + 4 * (i + 1)]
        params["layers"].append({
            "ln1_g": jnp.ones((hidden,), jnp.float32),
            "ln1_b": jnp.zeros((hidden,), jnp.float32),
            "w_qkv": (jax.random.normal(k0, (hidden, 3 * hidden), jnp.float32)
                      * scale).astype(jnp.bfloat16),
            "b_qkv": jnp.zeros((3 * hidden,), jnp.float32),
            "w_o": (jax.random.normal(k1, (hidden, hidden), jnp.float32)
                    * scale).astype(jnp.bfloat16),
            "b_o": jnp.zeros((hidden,), jnp.float32),
            "ln2_g": jnp.ones((hidden,), jnp.float32),
            "ln2_b": jnp.zeros((hidden,), jnp.float32),
            "w_fc1": (jax.random.normal(k2, (hidden, mlp_ratio * hidden),
                                        jnp.float32) * scale
                      ).astype(jnp.bfloat16),
            "b_fc1": jnp.zeros((mlp_ratio * hidden,), jnp.float32),
            "w_fc2": (jax.random.normal(k3, (mlp_ratio * hidden, hidden),
                                        jnp.float32) * scale
                      ).astype(jnp.bfloat16),
            "b_fc2": jnp.zeros((hidden,), jnp.float32),
        })
    return params


def vit_forward(images, params, *, num_heads, select_layer, mlp_activation):
    """images: (B, C, H, W) NCHW.  Returns patch features (B, N, hidden) f32."""
    B, C, H, W = images.shape
    P = params["patch"]
    D = params["hidden"]
    nH, nW = H // P, W // P
    Np = nH * nW
    T = Np + 1                           # +CLS
    T_pad = _round_up(T, 16)             # bf16 sublane-aligned token count
    M = B * T_pad

    # --- patch embedding: stride-P conv == matmul over flattened patches ----
    x = images.reshape(B, C, nH, P, nW, P)
    x = x.transpose(0, 2, 4, 1, 3, 5).reshape(B * Np, C * P * P)
    k_in = C * P * P
    k_pad = params["w_patch"].shape[0]
    x = jnp.pad(x, ((0, 0), (0, k_pad - k_in))).astype(jnp.bfloat16)
    x = fused_linear(x, params["w_patch"], params["b_patch"])   # (B*Np, D) bf16
    x = x.reshape(B, Np, D)

    # --- CLS token + position embedding (bf16 glue), pad token axis ---------
    cls = jnp.broadcast_to(params["cls"], (B, 1, D))
    x = jnp.concatenate([cls, x], axis=1) + params["pos"]
    x = jnp.pad(x, ((0, 0), (0, T_pad - T), (0, 0)))
    x2d = x.reshape(M, D)                # residual stream carried in bf16

    # hidden_states[0] is the embedding output; hidden_states[i] is the output
    # of layer i (HF convention).  Only run the layers actually needed.
    L = len(params["layers"])
    n_run = L + 1 + select_layer if select_layer < 0 else select_layer

    for lp in params["layers"][:n_run]:
        # ---- attention block (pre-LN folded into the QKV matmul) -----------
        qkv = fused_linear(x2d, lp["w_qkv"], lp["b_qkv"],
                           ln=(lp["ln1_g"], lp["ln1_b"], 1e-5))
        attn = attention(qkv.reshape(B, T_pad, 3 * D),
                         num_heads=num_heads, hidden=D, t_true=T)
        x2d = fused_linear(attn.reshape(M, D), lp["w_o"], lp["b_o"],
                           residual=x2d)

        # ---- MLP block (pre-LN + activation fused into fc1, residual in fc2)
        h = fused_linear(x2d, lp["w_fc1"], lp["b_fc1"],
                         ln=(lp["ln2_g"], lp["ln2_b"], 1e-5),
                         activation=mlp_activation)
        x2d = fused_linear(h, lp["w_fc2"], lp["b_fc2"], residual=x2d)

    feats = x2d.reshape(B, T_pad, D)
    # feature_select == "patch": drop CLS token and padded rows
    return feats[:, 1:T, :].astype(jnp.float32)


# ---------------------------------------------------------------------------
# ClipDinoVisionTower (JAX / Pallas equivalent of the PyTorch module)
# ---------------------------------------------------------------------------

class ClipDinoVisionTower:
    def __init__(self, clip_params, dino_params, num_heads=4):
        self.clip_params = clip_params
        self.dino_params = dino_params
        self.num_heads = num_heads
        self.is_loaded = True

    def __call__(self, images):
        # CLIP tower: penultimate hidden state (select_layer=-2), quick_gelu.
        clip_features = vit_forward(images, self.clip_params,
                                    num_heads=self.num_heads,
                                    select_layer=-2,
                                    mlp_activation="quick_gelu")
        # DINO tower: last hidden state (select_layer=-1), GELU.
        dino_features = vit_forward(images, self.dino_params,
                                    num_heads=self.num_heads,
                                    select_layer=-1,
                                    mlp_activation="gelu_tanh")
        return [clip_features, dino_features]

    @property
    def hidden_size(self):
        return [self.clip_params["hidden"], self.dino_params["hidden"]]


# ---------------------------------------------------------------------------
# Main
# ---------------------------------------------------------------------------

if __name__ == "__main__":
    key = jax.random.PRNGKey(0)
    k_img, k_clip, k_dino = jax.random.split(key, 3)

    # Small synthetic shapes with 128-aligned hidden dims (lane-dense stores):
    # batch=2, 3 channels, 16x16 images, patch=8 -> 4 patch tokens (+1 CLS).
    # CLIP hidden=128 (2 layers, select -2 -> 1 layer runs),
    # DINO hidden=256 (2 layers, select -1 -> 2 layers run).
    B, C, H, W, P = 2, 3, 16, 16, 8
    num_tokens = (H // P) * (W // P) + 1

    images = jax.random.normal(k_img, (B, C, H, W), jnp.float32)

    clip_params = init_vit_params(k_clip, in_ch=C, patch=P, hidden=128,
                                  num_layers=2, num_tokens=num_tokens)
    dino_params = init_vit_params(k_dino, in_ch=C, patch=P, hidden=256,
                                  num_layers=2, num_tokens=num_tokens)

    tower = ClipDinoVisionTower(clip_params, dino_params, num_heads=4)
    feats = tower(images)
    feats = jax.block_until_ready(feats)

    assert feats[0].shape == (B, 4, 128), feats[0].shape
    assert feats[1].shape == (B, 4, 256), feats[1].shape
    assert all(bool(jnp.all(jnp.isfinite(f))) for f in feats)

    print("KERNEL_OK")
</pallas_src>

<mosaic_0001>
module attributes {stable_mosaic.version = 11 : i64} {
  func.func @_fused_linear_kernel(%arg0: i32, %arg1: i32, %arg2: memref<8x256xbf16, #tpu.memory_space<vmem>>, %arg3: memref<256x128xbf16, #tpu.memory_space<vmem>>, %arg4: memref<1x128xf32, #tpu.memory_space<vmem>>, %arg5: memref<8x128xbf16, #tpu.memory_space<vmem>>) attributes {dimension_semantics = [#tpu.dimension_semantics<parallel>, #tpu.dimension_semantics<parallel>], iteration_bounds = array<i64: 1, 1>, scalar_prefetch = 0 : i64, scratch_operands = 0 : i64, tpu.core_type = #tpu.core_type<tc>, window_params = [{transform_indices = @transform_0, window_bounds = array<i64: 8, 256>}, {transform_indices = @transform_1, window_bounds = array<i64: 256, 128>}, {transform_indices = @transform_2, window_bounds = array<i64: 1, 128>}, {transform_indices = @transform_3, window_bounds = array<i64: 8, 128>}]} {
    %c0 = arith.constant 0 : index
    %c0_0 = arith.constant 0 : index
    %0 = vector.load %arg2[%c0, %c0_0] : memref<8x256xbf16, #tpu.memory_space<vmem>>, vector<8x256xbf16>
    %c0_1 = arith.constant 0 : index
    %c0_2 = arith.constant 0 : index
    %1 = vector.load %arg3[%c0_1, %c0_2] : memref<256x128xbf16, #tpu.memory_space<vmem>>, vector<256x128xbf16>
    %cst = arith.constant dense<0.000000e+00> : vector<8x128xf32>
    %2 = tpu.matmul %0, %1, %cst {dimension_numbers = #tpu.dot_dimension_numbers<[1], [0], [0], [1], [0, 0, 1, 1], [], []>} : vector<8x256xbf16>, vector<256x128xbf16>, vector<8x128xf32> -> vector<8x128xf32>
    %c0_3 = arith.constant 0 : index
    %c0_4 = arith.constant 0 : index
    %3 = vector.load %arg4[%c0_3, %c0_4] : memref<1x128xf32, #tpu.memory_space<vmem>>, vector<1x128xf32>
    %4 = vector.broadcast %3 : vector<1x128xf32> to vector<8x128xf32>
    %5 = arith.addf %2, %4 : vector<8x128xf32>
    %6 = arith.truncf %5 : vector<8x128xf32> to vector<8x128xbf16>
    %c0_5 = arith.constant 0 : index
    %c0_6 = arith.constant 0 : index
    %7 = vector.load %arg5[%c0_5, %c0_6] : memref<8x128xbf16, #tpu.memory_space<vmem>>, vector<8x128xbf16>
    tpu.vector_store %arg5[%c0_5, %c0_6], %6 {strides = array<i32>} : memref<8x128xbf16, #tpu.memory_space<vmem>>, vector<8x128xbf16>,
    return
  }
  func.func @transform_0(%arg0: i32, %arg1: i32) -> (i32, i32) {
    %c0_i32 = arith.constant 0 : i32
    %c0_i32_0 = arith.constant 0 : i32
    return %arg0, %c0_i32 : i32, i32
  }
  func.func @transform_1(%arg0: i32, %arg1: i32) -> (i32, i32) {
    %c0_i32 = arith.constant 0 : i32
    %c0_i32_0 = arith.constant 0 : i32
    return %c0_i32, %arg1 : i32, i32
  }
  func.func @transform_2(%arg0: i32, %arg1: i32) -> (i32, i32) {
    %c0_i32 = arith.constant 0 : i32
    %c0_i32_0 = arith.constant 0 : i32
    return %c0_i32, %arg1 : i32, i32
  }
  func.func @transform_3(%arg0: i32, %arg1: i32) -> (i32, i32) {
    %c0_i32 = arith.constant 0 : i32
    return %arg0, %arg1 : i32, i32
  }
}

</mosaic_0001>

<bundles_post_ra>
// kernel: tpu_custom_call.1
= control target key start
LH: loop header
LB: loop body
LE: loop exit
PB: predicated region body
PF: predicated region fallthrough
CT: control target
= control target key end

     0   :  { %8 = vsyncpa [#allocation3], 0  ;;  %s410_s0 = inlined_call_operand.hbm [shape: bf16[8,256], index: 0, kind: input, shape index: {}]   ;;  %s411_s1 = inlined_call_operand.hbm [shape: bf16[256,128], index: 1, kind: input, shape index: {}]   ;;  %s412_s2 = inlined_call_operand.vmem [shape: f32[1,128], index: 2, kind: input, shape index: {}]   ;;  %s413_s3 = inlined_call_operand.hbm [shape: bf16[8,128], index: 3, kind: output, shape index: {}]  }
   0x1   :  { %9 = vsyncpa [#allocation6], 0 }
   0x2   :  { %10 = vsyncpa [#allocation4], 0  ;;  %s373_s12 = smov [#allocation2]   ;;  %s374_s14 = smov [#allocation5]  }
   0x3   :  { %s17_s13 = sshll.u32 %s373_s12, 4  ;;  %s26_s15 = sshll.u32 %s374_s14, 4  ;;  %s18_s13 = int_to_ptr.vmem [resolvable:$true] %s17_s13  ;;  %s27_s15 = int_to_ptr.vmem [resolvable:$true] %s26_s15 }
   0x4   :  { %s315_s16 = scalar_lea.vmem %s18_s13, 128  ;;  %p320_p1 = scmp.lt.s32.totalorder %s18_s13, %s18_s13 }
   0x5   :  { %p316_p0 = scmp.ne.s32.totalorder %s18_s13, %s315_s16  ;;  %p321_p2 = scmp.lt.s32.totalorder %s315_s16, %s315_s16 }
   0x7   :  { %p322_p3 = por %p321_p2, %p320_p1 }
   0x9   :  { %p323_p4 = pnand %p322_p3, %p316_p0 }
   0xb   :  { %326 = shalt.err (!%p323_p4)
}
   0xc   :  { %20 = dma.hbm_to_vmem [thread:$0]  %s410_s0, 128, %s18_s13, [#allocation3]  }
   0xd   :  { %s335_s19 = scalar_lea.vmem %s27_s15, 2048  ;;  %p340_p6 = scmp.lt.s32.totalorder %s27_s15, %s27_s15 }
   0xe   :  { %p336_p5 = scmp.ne.s32.totalorder %s27_s15, %s335_s19  ;;  %p341_p7 = scmp.lt.s32.totalorder %s335_s19, %s335_s19 }
  0x10   :  { %p342_p8 = por %p341_p7, %p340_p6 }
  0x12   :  { %p343_p9 = pnand %p342_p8, %p336_p5 }
  0x14   :  { %346 = shalt.err (!%p343_p9)
}
  0x15   :  { %s375_s20 = smov 64   ;;  %s376_s21 = smov 4  }
  0x16   :  { %32 = dma.hbm_to_vmem [thread:$0]  %s411_s1, 2048, %s27_s15, [#allocation6], %s375_s20, %s375_s20, %s376_s21  }
  0x17   :  { %367 = dma.done.wait [#allocation3], 128  }
  0x18   :  { %368 = vsyncadd [#allocation3], 4294967168 }
  0x19   :  { %369 = dma.done.wait [#allocation6], 2048  }
  0x1a   :  { %370 = vsyncadd [#allocation6], 4294965248  ;;  %v289_v0 = vld [vmem:[#allocation5 + $0x78] sm:$0xff]   ;;  %v291_v2 = vld [vmem:[#allocation5 + $0x70] sm:$0xff]   ;;  %s377_s24 = smov [#allocation7]  }
  0x1b   :  { %v290_v1 = vld [vmem:[#allocation5 + $0x38] sm:$0xff]   ;;  %262 = vmatprep.subr.bf16.mxu0 %v289_v0  ;;  %v292_v3 = vld [vmem:[#allocation5 + $0x30] sm:$0xff]   ;;  %v293_v4 = vld [vmem:[#allocation5 + $0x68] sm:$0xff]   ;;  %s233_s25 = sshll.u32 %s377_s24, 4  ;;  %s234_s25 = int_to_ptr.vmem [resolvable:$true] %s233_s25 }
  0x1c   :  { %263 = vmatpush3.bf16.msra.mxu0 %v290_v1  ;;  %v294_v5 = vld [vmem:[#allocation5 + $0x28] sm:$0xff]   ;;  %v295_v6 = vld [vmem:[#allocation5 + $0x60] sm:$0xff]   ;;  %v297_v8 = vld [vmem:[#allocation5 + $0x58] sm:$0xff]   ;;  %s347_s26 = scalar_lea.vmem %s234_s25, 64  ;;  %p352_p11 = scmp.lt.s32.totalorder %s234_s25, %s234_s25 }
  0x1d   :  { %264 = vmatprep.subr.bf16.mxu0 %v291_v2  ;;  %v296_v7 = vld [vmem:[#allocation5 + $0x20] sm:$0xff]   ;;  %v298_v9 = vld [vmem:[#allocation5 + $0x18] sm:$0xff]   ;;  %v299_v10 = vld [vmem:[#allocation5 + $0x50] sm:$0xff]   ;;  %p348_p10 = scmp.ne.s32.totalorder %s234_s25, %s347_s26  ;;  %p353_p12 = scmp.lt.s32.totalorder %s347_s26, %s347_s26 }
  0x1e   :  { %v42_v11 = vld [vmem:[#allocation2] sm:$0xff]  ;;  %v300_v13 = vld [vmem:[#allocation5 + $0x10] sm:$0xff]   ;;  %v301_v14 = vld [vmem:[#allocation5 + $0x48] sm:$0xff]  }
  0x1f   :  { %v245_v12 = vcombine.high %v42_v11, %v42_v11  ;;  %v302_v15 = vld [vmem:[#allocation5 + $0x8] sm:$0xff]   ;;  %v303_v16 = vld [vmem:[#allocation5 + $0x40] sm:$0xff]   ;;  %v244_v18 = vcombine.low %v42_v11, %v42_v11  ;;  %v243_v20 = vld [vmem:[%s412_s2] ss:$0 sm:$0xff]  ;;  %p354_p13 = por %p353_p12, %p352_p11 }
  0x20   :  { %265 = vmatpush3.bf16.msra.mxu0 %v292_v3  ;;  %v304_v17 = vld [vmem:[#allocation5] sm:$0xff]  }
  0x21   :  { %266 = vmatprep.subr.bf16.mxu0 %v293_v4  ;;  %217 = vmatprep.mubr.bf16.mxu0 %v245_v12  ;;  %p355_p0 = pnand %p354_p13, %p348_p10 }
  0x24   :  { %267 = vmatpush3.bf16.msra.mxu0 %v294_v5 }
  0x25   :  { %268 = vmatprep.subr.bf16.mxu0 %v295_v6 }
  0x28   :  { %269 = vmatpush3.bf16.msra.mxu0 %v296_v7 }
  0x29   :  { %270 = vmatprep.subr.bf16.mxu0 %v297_v8 }
  0x2c   :  { %271 = vmatpush3.bf16.msra.mxu0 %v298_v9 }
  0x2d   :  { %272 = vmatprep.subr.bf16.mxu0 %v299_v10 }
  0x30   :  { %273 = vmatpush3.bf16.msra.mxu0 %v300_v13 }
  0x31   :  { %274 = vmatprep.subr.bf16.mxu0 %v301_v14 }
  0x34   :  { %275 = vmatpush3.bf16.msra.mxu0 %v302_v15 }
  0x35   :  { %276 = vmatprep.subr.bf16.mxu0 %v303_v16 }
  0x38   :  { %277 = vmatpush3.bf16.msra.mxu0 %v304_v17 }
  0x3b   :  { %218 = vmatmul.mubr.bf16.vlgmr.msra.gmra.mxu0 %v244_v18 }
  0xfb   :  { %v278_v19 = vpop.f32.mrf.mxu0 }
  0xfd   :  { %v279_v21 = vpop.f32.mrf.mxu0 }
  0xfe   :  { %v280_v22 = vadd.f32 %v279_v21, %v278_v19 }
  0xff   :  { %v281_v23 = vpop.f32.mrf.mxu0 }
 0x100   :  { %v220_v24 = vadd.f32 %v280_v22, %v243_v20 }
 0x101   :  { %v282_v25 = vpop.f32.mrf.mxu0 }
 0x102   :  { %v225_v26 = vpack.c.bf16 %v220_v24, %v220_v24 }
 0x104   :  { %226 = vst [vmem:[#allocation7] sm:$0xf] %v225_v26 }
 0x105   :  { %358 = shalt.err (!%p355_p0)
}
 0x106   :  { %236 = dma.vmem_to_hbm [thread:$0]  %s234_s25, 64, %s413_s3, [#allocation4]  }
 0x107   :  { %371 = dma.done.wait [#allocation4], 64  }
 0x108   :  { %372 = vsyncadd [#allocation4], 4294967232 }
 0x109   :  { %240 = vsyncpa [#allocation3], 1 }
 0x10a   :  { %241 = vsyncpa [#allocation6], 1 }
 0x10b   :  { %242 = vsyncpa [#allocation4], 1 }

</bundles_post_ra>
